<compile_context>
chip_gen: v7x
topology: tpu7x:2x2x1
jax: 0.10.0
libtpu: 0.0.40
codegen_flags: <defaults>
</compile_context>

<pallas_src>
import functools

import jax
import jax.numpy as jnp
from jax.experimental import pallas as pl
from jax.experimental.pallas import tpu as pltpu


def _dilate_depth_kernel(x_ref, o_ref, *, kernel_size):
    """x_ref: (TN, D, THW) native dtype; o_ref: (TN, D_out, THW) f32."""
    pad = kernel_size // 2
    d_out = o_ref.shape[1]

    # Single tile read; accumulate in f32 values (vregs / compiler-managed
    # temps) and write the output block exactly once — no scratch zero-init
    # or read-modify-write passes over a VMEM accumulator.
    xv = x_ref[...].astype(jnp.float32)

    if pad > 0:
        zpad = jnp.zeros((xv.shape[0], pad, xv.shape[2]), jnp.float32)
        xp = jnp.concatenate([zpad, xv, zpad], axis=1)   # (TN, D + 2*pad, THW)
    else:
        xp = xv

    # All-ones Conv1d == sliding-window sum along depth: sum of K equal-length
    # shifted slices of the zero-padded tile.  K is small -> static unroll.
    # TODO(synk): for large K switch to a running-sum recurrence (O(1)/row).
    acc = xp[:, 0:d_out, :]
    for j in range(1, kernel_size):
        acc = acc + xp[:, j:j + d_out, :]

    # Threshold: (conv(x) > 0.5).float()
    o_ref[...] = (acc > 0.5).astype(jnp.float32)


def dilate_along_depth(x, kernel_size_depth):
    """JAX/Pallas equivalent of DilateAlongDepth.forward.

    x: (B, C, D, H, W) array (any real dtype).
    Returns: (B, C, D_out, H, W) float32 with
        D_out = D + 2*(K//2) - K + 1  (== D for odd K), matching Conv1d.
    """
    b, c, d, h, w = x.shape
    k = int(kernel_size_depth)
    pad = k // 2
    d_out = d + 2 * pad - k + 1

    n = b * c
    hw = h * w
    x2 = x.reshape(n, d, hw)          # contiguous reshape, no transpose/f32 copy

    # TODO(synk): for very small / non-8-aligned D, a flattened (N*D, HW)
    # layout with an iota row-mask would pack sublanes more densely.

    # --- tile selection -----------------------------------------------------
    lane = 128
    target_block_bytes = 4 * 1024 * 1024          # per f32 output block
    row_bytes = d_out * hw * 4                    # one n-row of the f32 output

    if row_bytes <= target_block_bytes:
        # Full-HW blocks: one contiguous HBM burst per n-slab, lane-dense,
        # and no wrapper-side pad/slice round-trips.
        thw = hw
        tn = max(1, min(n, target_block_bytes // max(row_bytes, 1)))
    else:
        # A single n-row exceeds the budget: split HW into lane-dense chunks
        # (remainder block handled by Pallas masked writeback).
        tn = 1
        groups = max(1, (target_block_bytes // (d_out * 4)) // lane)
        thw = groups * lane
        if thw >= hw:
            thw = hw

    grid_n = pl.cdiv(n, tn)
    grid_hw = pl.cdiv(hw, thw)
    # v7x shards "parallel" grid axes over its 2 TensorCores: keep >= 2 blocks
    # when there is independent work, instead of collapsing to a 1x1 grid.
    if grid_n == 1 and grid_hw == 1 and n >= 2:
        tn = pl.cdiv(n, 2)
        grid_n = pl.cdiv(n, tn)
    grid = (grid_n, grid_hw)

    in_itemsize = jnp.dtype(x2.dtype).itemsize
    cost = pl.CostEstimate(
        flops=int((k + 1) * n * d_out * hw),      # K-1 adds + compare, approx.
        transcendentals=0,
        bytes_accessed=int(n * d * hw * in_itemsize + n * d_out * hw * 4),
    )

    kernel = functools.partial(_dilate_depth_kernel, kernel_size=k)

    out2 = pl.pallas_call(
        kernel,
        out_shape=jax.ShapeDtypeStruct((n, d_out, hw), jnp.float32),
        grid_spec=pltpu.PrefetchScalarGridSpec(
            num_scalar_prefetch=0,
            grid=grid,
            in_specs=[pl.BlockSpec((tn, d, thw), lambda i, j: (i, 0, j))],
            out_specs=pl.BlockSpec((tn, d_out, thw), lambda i, j: (i, 0, j)),
        ),
        compiler_params=pltpu.CompilerParams(
            dimension_semantics=("parallel", "parallel"),
            vmem_limit_bytes=48 * 1024 * 1024),
        cost_estimate=cost,
    )(x2)

    return out2.reshape(b, c, d_out, h, w)


def _reference(x, kernel_size_depth):
    """Pure-JAX reference matching the PyTorch module semantics."""
    pad = kernel_size_depth // 2
    d = x.shape[2]
    d_out = d + 2 * pad - kernel_size_depth + 1
    xp = jnp.pad(x.astype(jnp.float32),
                 ((0, 0), (0, 0), (pad, pad), (0, 0), (0, 0)))
    acc = jnp.zeros(x.shape[:2] + (d_out,) + x.shape[3:], jnp.float32)
    for j in range(kernel_size_depth):
        acc = acc + xp[:, :, j:j + d_out]
    return (acc > 0.5).astype(jnp.float32)


if __name__ == "__main__":
    key = jax.random.PRNGKey(0)
    k1, k2, k3 = jax.random.split(key, 3)

    # Primary check: odd kernel size, HW a multiple of 128.
    B, C, D, H, W = 2, 4, 8, 16, 16
    K = 3
    x = (jax.random.uniform(k1, (B, C, D, H, W)) > 0.8).astype(jnp.float32)
    out = jax.block_until_ready(dilate_along_depth(x, K))
    ref = _reference(x, K)
    assert out.shape == ref.shape, (out.shape, ref.shape)
    assert jnp.array_equal(out, ref), "mismatch vs reference (odd K)"

    # Even kernel size (D_out = D + 1) and HW not a multiple of 128
    # (full-extent last-dim blocks, masked lane stores).
    x_b = (jax.random.uniform(k2, (1, 2, 5, 10, 10)) > 0.7).astype(jnp.float32)
    out_b = jax.block_until_ready(dilate_along_depth(x_b, 4))
    ref_b = _reference(x_b, 4)
    assert out_b.shape == ref_b.shape, (out_b.shape, ref_b.shape)
    assert jnp.array_equal(out_b, ref_b), "mismatch vs reference (even K)"

    # Non-divisible N (remainder block on the n axis) with odd HW.
    x_c = (jax.random.uniform(k3, (3, 1, 6, 9, 11)) > 0.6).astype(jnp.float32)
    out_c = jax.block_until_ready(dilate_along_depth(x_c, 5))
    ref_c = _reference(x_c, 5)
    assert out_c.shape == ref_c.shape, (out_c.shape, ref_c.shape)
    assert jnp.array_equal(out_c, ref_c), "mismatch vs reference (ragged N)"

    print("KERNEL_OK")
</pallas_src>

<mosaic_0001>
module attributes {stable_mosaic.version = 11 : i64} {
  func.func @_dilate_depth_kernel(%arg0: i32, %arg1: i32, %arg2: memref<4x8x256xf32, #tpu.memory_space<vmem>>, %arg3: memref<4x8x256xf32, #tpu.memory_space<vmem>>) attributes {dimension_semantics = [#tpu.dimension_semantics<parallel>, #tpu.dimension_semantics<parallel>], iteration_bounds = array<i64: 2, 1>, scalar_prefetch = 0 : i64, scratch_operands = 0 : i64, tpu.core_type = #tpu.core_type<tc>, window_params = [{transform_indices = @transform_0, window_bounds = array<i64: 4, 8, 256>}, {transform_indices = @transform_1, window_bounds = array<i64: 4, 8, 256>}]} {
    %c0 = arith.constant 0 : index
    %c0_0 = arith.constant 0 : index
    %c0_1 = arith.constant 0 : index
    %0 = vector.load %arg2[%c0, %c0_0, %c0_1] : memref<4x8x256xf32, #tpu.memory_space<vmem>>, vector<4x8x256xf32>
    %cst = arith.constant 0.000000e+00 : f32
    %1 = vector.broadcast %cst : f32 to vector<4x1x256xf32>
    %2 = tpu.concatenate %1, %0, %1 in 1 : vector<4x1x256xf32>, vector<4x8x256xf32>, vector<4x1x256xf32> -> vector<4x10x256xf32>
    %3 = vector.extract_strided_slice %2 {offsets = [0, 0, 0], sizes = [4, 8, 256], strides = [1, 1, 1]} : vector<4x10x256xf32> to vector<4x8x256xf32>
    %4 = vector.extract_strided_slice %2 {offsets = [0, 1, 0], sizes = [4, 8, 256], strides = [1, 1, 1]} : vector<4x10x256xf32> to vector<4x8x256xf32>
    %5 = arith.addf %3, %4 : vector<4x8x256xf32>
    %6 = vector.extract_strided_slice %2 {offsets = [0, 2, 0], sizes = [4, 8, 256], strides = [1, 1, 1]} : vector<4x10x256xf32> to vector<4x8x256xf32>
    %7 = arith.addf %5, %6 : vector<4x8x256xf32>
    %cst_2 = arith.constant 5.000000e-01 : f32
    %8 = vector.broadcast %cst_2 : f32 to vector<4x8x256xf32>
    %9 = arith.cmpf ogt, %7, %8 : vector<4x8x256xf32>
    %10 = arith.extui %9 : vector<4x8x256xi1> to vector<4x8x256xi32>
    %11 = arith.sitofp %10 : vector<4x8x256xi32> to vector<4x8x256xf32>
    %c0_3 = arith.constant 0 : index
    %c0_4 = arith.constant 0 : index
    %c0_5 = arith.constant 0 : index
    %12 = vector.load %arg3[%c0_3, %c0_4, %c0_5] : memref<4x8x256xf32, #tpu.memory_space<vmem>>, vector<4x8x256xf32>
    tpu.vector_store %arg3[%c0_3, %c0_4, %c0_5], %11 {strides = array<i32>} : memref<4x8x256xf32, #tpu.memory_space<vmem>>, vector<4x8x256xf32>,
    return
  }
  func.func @transform_0(%arg0: i32, %arg1: i32) -> (i32, i32, i32) {
    %c0_i32 = arith.constant 0 : i32
    %c0_i32_0 = arith.constant 0 : i32
    return %arg0, %c0_i32, %arg1 : i32, i32, i32
  }
  func.func @transform_1(%arg0: i32, %arg1: i32) -> (i32, i32, i32) {
    %c0_i32 = arith.constant 0 : i32
    %c0_i32_0 = arith.constant 0 : i32
    return %arg0, %c0_i32, %arg1 : i32, i32, i32
  }
}

</mosaic_0001>

<bundles_post_ra>
// kernel: tpu_custom_call.1
= control target key start
LH: loop header
LB: loop body
LE: loop exit
PB: predicated region body
PF: predicated region fallthrough
CT: control target
= control target key end

     0   :  { %6 = vsyncpa [#allocation3], 0  ;;  %s908_s0 = inlined_call_operand.hbm [shape: f32[8,8,256], index: 0, kind: input, shape index: {}]   ;;  %s909_s1 = inlined_call_operand.hbm [shape: f32[8,8,256], index: 1, kind: output, shape index: {}]  }
   0x1   :  { %8 = vsyncpa [#allocation3 + $0x1], 0 }
   0x2   :  { %9 = vsyncpa [#allocation4], 0 }
   0x3   :  { %11 = vsyncpa [#allocation4 + $0x1], 0  ;;  %s668_s6 = smov 0   ;;  %s670_s7 = smov 0  }
   0x4   :  { %s672_s8 = smov 0   ;;  %s674_s9 = smov 0  }
   0x5   :  { %s676_s10 = smov 0   ;;  %s678_s11 = smov 0  }
   0x6 LB: > { %s441_s12 = sadd.s32 4294967295, %s649_s11   ;;  %s442_s13 = sadd.s32 4294967294, %s649_s11   ;;  %s649_s11 = sphi %s678_s11, %s17_s11   ;;  %s645_s10 = sphi %s676_s10, %s924_s10   ;;  %s641_s9 = sphi %s674_s9, %s923_s9   ;;  %s637_s8 = sphi %s672_s8, %s922_s8   ;;  %s633_s7 = sphi %s670_s7, %s921_s7   ;;  %s629_s6 = sphi %s668_s6, %s920_s6  }
   0x7   : > { %s29_s14 = sadd.s32 1, %s645_s10  ;;  %s38_s15 = sadd.s32 1, %s637_s8 }
   0x8   : > { %p31_p0 = scmp.ge.s32.totalorder %s29_s14, 2  ;;  %p45_p1 = scmp.ne.s32.totalorder %s637_s8, %s633_s7 }
   0x9   : > { %p46_p2 = scmp.eq.s32.totalorder %s649_s11, 0  ;;  %p51_p3 = scmp.ne.s32.totalorder %s633_s7, %s629_s6 }
   0xa   : > { %s926_s14 = smov (%p31_p0, %s29_s14), 0  ;;  %p52_p5 = scmp.eq.s32.totalorder %s441_s12, 0 }
   0xb   : > { %p709_p4 = por %p46_p2, %p45_p1  ;;  %s33_s17 = ssub.s32 %s645_s10, %s926_s14 }
   0xc   : > { %p77_p6 = scmp.eq.s32.totalorder %s441_s12, 1  ;;  %p36_p7 = scmp.eq.s32.totalorder %s33_s17, 0 }
   0xd   : > { %p715_p8 = por %p52_p5, %p51_p3  ;;  %p83_p10 = scmp.eq.s32.totalorder %s442_s13, 1 }
   0xe   : > { %p719_p9 = por %p77_p6, %p45_p1  ;;  %p482_p13 = scmp.lt.s32.totalorder %s649_s11, 2 }
   0xf   : > { %s724_s20 = scalar_select %p36_p7, %s637_s8, %s38_s15  }
  0x10   : > { %s913_s19 = scalar_select %p719_p9, 1, 0 }
  0x11   : > { %p726_p11 = por %p83_p10, %p51_p3  ;;  %s103_s22 = sand.u32 1, %s637_s8  }
  0x12   : > { %s445_s23 = sshll.u32 %s103_s22, 6  ;;  %s467_s24 = sshll.u32 %s645_s10, 10 }
  0x13   : > { %s914_s21 = scalar_select %p726_p11, 1, 0 }
  0x14   : > { %s737_s27 = scalar_lea.hbm %s908_s0, %s467_s24  ;;  %s107_s28 = scalar_lea.vmem [#allocation2], %s445_s23 }
  0x15   : > { %s117_s29 = sshll.u32 %s107_s28, 4  ;;  %p743_p0 = pnand %p482_p13, %p709_p4  ;;  %s739_s29 = int_to_ptr.vmem [resolvable:$true] %s117_s29 }
  0x16   : > { %s748_s2 = scalar_lea.sflag [#allocation3], %s103_s22  ;;  %s537_s3 = scalar_lea.hbm %s737_s27, 1024 }
  0x17   : > { %p538_p2 = scmp.ne.s32.totalorder %s737_s27, %s537_s3  ;;  %p539_p3 = pneg %p743_p0 }
  0x18   : > { %s542_s12 = scalar_lea.hbm %s908_s0, 2048  ;;  %p543_p4 = scmp.lt.u32.totalorder %s737_s27, %s908_s0 }
  0x19   : > { %p540_p5 = pnand %p539_p3, %p538_p2  ;;  %p544_p7 = scmp.lt.u32.totalorder %s542_s12, %s537_s3 }
  0x1a   : > { %p546_p13 = scmp.lt.u32.totalorder %s537_s3, %s737_s27 }
  0x1b   : > { %p541_p6 = pneg %p540_p5  ;;  %p545_p10 = por %p544_p7, %p543_p4 }
  0x1d   : > { %p547_p12 = por %p546_p13, %p545_p10 }
  0x1f   : > { %p548_p1 = pnand %p547_p12, %p541_p6 }
  0x21   : > { %551 = shalt.err (!%p548_p1)
}
  0x22   : > { %s552_s16 = scalar_lea.vmem %s739_s29, 1024  ;;  %s651_s17 = smov [#allocation2]  }
  0x23   : > { %p553_p2 = scmp.ne.s32.totalorder %s739_s29, %s552_s16  ;;  %s557_s22 = sshll.u32 %s651_s17, 4  ;;  %s558_s22 = int_to_ptr.vmem [resolvable:$false] %s557_s22 }
  0x24   : > { %s559_s23 = scalar_lea.vmem %s558_s22, 2048  ;;  %p560_p9 = scmp.lt.s32.totalorder %s739_s29, %s558_s22 }
  0x25   : > { %p555_p5 = pnand %p553_p2, %p539_p3  ;;  %p561_p4 = scmp.lt.s32.totalorder %s559_s23, %s552_s16 }
  0x27   : > { %p556_p11 = pneg %p555_p5  ;;  %p562_p7 = por %p561_p4, %p560_p9 }
  0x29   : > { %p563_p10 = pnand %p562_p7, %p556_p11 }
  0x2b   : > { %566 = shalt.err (!%p563_p10)
}
  0x2c   : > { %s652_s24 = smov 256   ;;  %s653_s25 = smov 16  }
  0x2d   : > { %477 = dma.hbm_to_vmem [thread:$0]  (!%p743_p0), %s737_s27, 1024, %s739_s29, %s748_s2, %s652_s24, %s652_s24, %s653_s25  }
  0x2e   : > { %p125_p12 = scmp.lt.s32.totalorder %s649_s11, 3  ;;  %p916_p1 = scmp.ge.s32.totalorder %s649_s11, 1 }
  0x30   : > { %p126_p3 = pnand %p916_p1, %p125_p12 }
  0x31   : > { %s780_s26 = sand.u32 (!%p126_p3), 1, %s633_s7  }
  0x32   : > { %129 = sbr.rel (%p126_p3) target bundleno = 106 (0x6a), region = 24  ;;  %s450_s28 = sshll.u32 (!%p126_p3), %s780_s26, 6 }
  0x33   : > { %s132_s3 = scalar_lea.sflag (!%p126_p3), [#allocation3], %s780_s26  ;;  %s786_s4 = scalar_lea.vmem (!%p126_p3), [#allocation2], %s450_s28 }
  0x39   : > { %620 = dma.done.wait (%p715_p8), %s132_s3, 1024  }
  0x3a   : > { %622 = vsyncadd (%p715_p8), %s132_s3, 4294966272  ;;  %v158_v0 = vld [vmem:[%s786_s4] sm:$0xff]  ;;  %vm190_vm0 = vcmask 1040384   ;;  %vm223_vm1 = vcmask 1046528   ;;  %vm264_vm2 = vcmask 1045504   ;;  %v159_v1 = vld [vmem:[%s786_s4 + $0x8] sm:$0xff] }
  0x3b   : > { %v160_v2 = vld [vmem:[%s786_s4 + $0x10] sm:$0xff]  ;;  %v174_v3 = vrot.slane %v158_v0, 7  ;;  %v175_v4 = vrot.slane %v159_v1, 7  ;;  %v161_v5 = vld [vmem:[%s786_s4 + $0x18] sm:$0xff]  ;;  %v162_v6 = vld [vmem:[%s786_s4 + $0x20] sm:$0xff]  ;;  %v654_v47 = vmov 0.0  }
  0x3c   : > { %v163_v7 = vld [vmem:[%s786_s4 + $0x28] sm:$0xff]  ;;  %v176_v8 = vrot.slane %v160_v2, 7  ;;  %v177_v9 = vrot.slane %v161_v5, 7  ;;  %v178_v10 = vrot.slane %v162_v6, 7  ;;  %s817_s18 = scalar_lea.vmem [#allocation5], %s450_s28  ;;  %v164_v62 = vld [vmem:[%s786_s4 + $0x30] sm:$0xff] }
  0x3d   : > { %v179_v11 = vrot.slane %v163_v7, 7  ;;  %v191_v12 = vsel %vm190_vm0, 0.0, %v174_v3  ;;  %v199_v13 = vsel %vm190_vm0, %v174_v3, 0.0  ;;  %v192_v14 = vsel %vm190_vm0, 0.0, %v175_v4  ;;  %v165_v63 = vld [vmem:[%s786_s4 + $0x38] sm:$0xff]  ;;  %s354_s27 = sshll.u32 %s817_s18, 4  ;;  %s851_s27 = int_to_ptr.vmem [resolvable:$true] %s354_s27 }
  0x3e   : > { %v200_v15 = vsel %vm190_vm0, %v175_v4, 0.0  ;;  %v224_v16 = vrot.slane %v191_v12, 1  ;;  %v225_v17 = vrot.slane %v199_v13, 1  ;;  %v265_v18 = vrot.slane %v191_v12, 2  ;;  %s469_s29 = sshll.u32 %s641_s9, 10  ;;  %s338_s9 = scalar_lea.sflag [#allocation4], %s780_s26 }
  0x3f   : > { %v266_v19 = vrot.slane %v199_v13, 2  ;;  %v227_v20 = vrot.slane %v192_v14, 1  ;;  %v228_v21 = vrot.slane %v200_v15, 1  ;;  %v268_v22 = vrot.slane %v192_v14, 2  ;;  %s857_s5 = scalar_lea.hbm %s909_s1, %s469_s29  ;;  %s567_s12 = scalar_lea.vmem %s851_s27, 1024 }
  0x40   : > { %v269_v23 = vrot.slane %v200_v15, 2  ;;  %v226_v24 = vsel %vm223_vm1, %v224_v16, %v225_v17  ;;  %v193_v26 = vsel %vm190_vm0, 0.0, %v176_v8  ;;  %v201_v27 = vsel %vm190_vm0, %v176_v8, 0.0  ;;  %p568_p8 = scmp.ne.s32.totalorder %s851_s27, %s567_s12  ;;  %p917_p9 = scmp.ne.s32.totalorder %s913_s19, 0 }
  0x41   : > { %v267_v25 = vsel %vm264_vm2, %v265_v18, %v266_v19  ;;  %v256_v28 = vadd.f32 %v226_v24, %v191_v12  ;;  %v229_v29 = vsel %vm223_vm1, %v227_v20, %v228_v21  ;;  %v230_v31 = vrot.slane %v193_v26, 1  ;;  %s655_s13 = smov [#allocation5]  }
  0x42   : > { %v270_v30 = vsel %vm264_vm2, %v268_v22, %v269_v23  ;;  %v257_v32 = vadd.f32 %v229_v29, %v192_v14  ;;  %v231_v33 = vrot.slane %v201_v27, 1  ;;  %v271_v34 = vrot.slane %v193_v26, 2  ;;  %p569_p11 = pnand %p568_p8, %p917_p9  ;;  %s571_s15 = sshll.u32 %s655_s13, 4  ;;  %s572_s15 = int_to_ptr.vmem [resolvable:$false] %s571_s15 }
  0x43   : > { %v272_v35 = vrot.slane %v201_v27, 2  ;;  %v297_v36 = vadd.f32 %v267_v25, %v256_v28  ;;  %v194_v37 = vsel %vm190_vm0, 0.0, %v177_v9  ;;  %v202_v38 = vsel %vm190_vm0, %v177_v9, 0.0  ;;  %s573_s16 = scalar_lea.vmem %s572_s15, 2048  ;;  %p574_p6 = scmp.lt.s32.totalorder %s851_s27, %s572_s15 }
  0x44   : > { %v195_v39 = vsel %vm190_vm0, 0.0, %v178_v10  ;;  %v298_v40 = vadd.f32 %v270_v30, %v257_v32  ;;  %v232_v41 = vsel %vm223_vm1, %v230_v31, %v231_v33  ;;  %v233_v43 = vrot.slane %v194_v37, 1  ;;  %p570_p0 = pneg %p569_p11  ;;  %p575_p13 = scmp.lt.s32.totalorder %s573_s16, %s567_s12 }
  0x45   : > { %v273_v42 = vsel %vm264_vm2, %v271_v34, %v272_v35  ;;  %vm305_vm3 = vcmp.gt.f32.partialorder %v297_v36, 0.5  ;;  %v258_v44 = vadd.f32 %v232_v41, %v193_v26  ;;  %v234_v45 = vrot.slane %v202_v38, 1 }
  0x46   : > { %v274_v46 = vrot.slane %v194_v37, 2  ;;  %v452_v48 = vsel %vm305_vm3, 1.0, %v654_v47  ;;  %vm306_vm4 = vcmp.gt.f32.partialorder %v298_v40, 0.5  ;;  %v275_v49 = vrot.slane %v202_v38, 2  ;;  %p576_p2 = por %p575_p13, %p574_p6 }
  0x47   : > { %v203_v50 = vsel %vm190_vm0, %v178_v10, 0.0  ;;  %329 = vst [vmem:[%s817_s18] sm:$0xff] %v452_v48  ;;  %v453_v51 = vsel %vm306_vm4, 1.0, %v654_v47  ;;  %v299_v52 = vadd.f32 %v273_v42, %v258_v44  ;;  %v235_v53 = vsel %vm223_vm1, %v233_v43, %v234_v45 }
  0x48   : > { %v236_v54 = vrot.slane %v195_v39, 1  ;;  %330 = vst [vmem:[%s817_s18 + $0x8] sm:$0xff] %v453_v51  ;;  %v259_v55 = vadd.f32 %v235_v53, %v194_v37  ;;  %v276_v56 = vsel %vm264_vm2, %v274_v46, %v275_v49  ;;  %v237_v57 = vrot.slane %v203_v50, 1  ;;  %p577_p5 = pnand %p576_p2, %p570_p0 }
  0x49   : > { %v277_v58 = vrot.slane %v195_v39, 2  ;;  %vm307_vm5 = vcmp.gt.f32.partialorder %v299_v52, 0.5  ;;  %v278_v59 = vrot.slane %v203_v50, 2  ;;  %v196_v60 = vsel %vm190_vm0, 0.0, %v179_v11 }
  0x4a   : > { %v204_v61 = vsel %vm190_vm0, %v179_v11, 0.0  ;;  %v454_v0 = vsel %vm307_vm5, 1.0, %v654_v47  ;;  %v300_v1 = vadd.f32 %v276_v56, %v259_v55  ;;  %v238_v2 = vsel %vm223_vm1, %v236_v54, %v237_v57 }
  0x4b   : > { %v239_v3 = vrot.slane %v196_v60, 1  ;;  %331 = vst [vmem:[%s817_s18 + $0x10] sm:$0xff] %v454_v0  ;;  %v260_v4 = vadd.f32 %v238_v2, %v195_v39  ;;  %v279_v5 = vsel %vm264_vm2, %v277_v58, %v278_v59  ;;  %v240_v6 = vrot.slane %v204_v61, 1 }
  0x4c   : > { %v280_v7 = vrot.slane %v196_v60, 2  ;;  %vm308_vm6 = vcmp.gt.f32.partialorder %v300_v1, 0.5  ;;  %v281_v8 = vrot.slane %v204_v61, 2  ;;  %v180_v9 = vrot.slane %v164_v62, 7 }
  0x4d   : > { %v181_v10 = vrot.slane %v165_v63, 7  ;;  %v455_v11 = vsel %vm308_vm6, 1.0, %v654_v47  ;;  %v301_v12 = vadd.f32 %v279_v5, %v260_v4  ;;  %v241_v13 = vsel %vm223_vm1, %v239_v3, %v240_v6 }
  0x4e   : > { %332 = vst [vmem:[%s817_s18 + $0x18] sm:$0xff] %v455_v11  ;;  %v261_v14 = vadd.f32 %v241_v13, %v196_v60  ;;  %v282_v15 = vsel %vm264_vm2, %v280_v7, %v281_v8  ;;  %v197_v16 = vsel %vm190_vm0, 0.0, %v180_v9  ;;  %v205_v17 = vsel %vm190_vm0, %v180_v9, 0.0 }
  0x4f   : > { %vm309_vm7 = vcmp.gt.f32.partialorder %v301_v12, 0.5  ;;  %v242_v18 = vrot.slane %v197_v16, 1  ;;  %v243_v19 = vrot.slane %v205_v17, 1  ;;  %v283_v20 = vrot.slane %v197_v16, 2 }
  0x50   : > { %v456_v21 = vsel %vm309_vm7, 1.0, %v654_v47  ;;  %v302_v22 = vadd.f32 %v282_v15, %v261_v14  ;;  %v284_v23 = vrot.slane %v205_v17, 2  ;;  %v198_v24 = vsel %vm190_vm0, 0.0, %v181_v10 }
  0x51   : > { %333 = vst [vmem:[%s817_s18 + $0x20] sm:$0xff] %v456_v21  ;;  %v244_v25 = vsel %vm223_vm1, %v242_v18, %v243_v19  ;;  %v206_v26 = vsel %vm190_vm0, %v181_v10, 0.0  ;;  %v245_v27 = vrot.slane %v198_v24, 1  ;;  %v286_v28 = vrot.slane %v198_v24, 2 }
  0x52   : > { %vm310_vm8 = vcmp.gt.f32.partialorder %v302_v22, 0.5  ;;  %v262_v29 = vadd.f32 %v244_v25, %v197_v16  ;;  %v285_v30 = vsel %vm264_vm2, %v283_v20, %v284_v23  ;;  %v246_v31 = vrot.slane %v206_v26, 1 }
  0x53   : > { %v457_v32 = vsel %vm310_vm8, 1.0, %v654_v47  ;;  %v287_v33 = vrot.slane %v206_v26, 2 }
  0x54   : > { %334 = vst [vmem:[%s817_s18 + $0x28] sm:$0xff] %v457_v32  ;;  %v303_v34 = vadd.f32 %v285_v30, %v262_v29  ;;  %v247_v35 = vsel %vm223_vm1, %v245_v27, %v246_v31 }
  0x55   : > { %v263_v36 = vadd.f32 %v247_v35, %v198_v24  ;;  %v288_v37 = vsel %vm264_vm2, %v286_v28, %v287_v33 }
  0x56   : > { %vm311_vm9 = vcmp.gt.f32.partialorder %v303_v34, 0.5 }
  0x57   : > { %v458_v38 = vsel %vm311_vm9, 1.0, %v654_v47  ;;  %v304_v39 = vadd.f32 %v288_v37, %v263_v36 }
  0x58   : > { %335 = vst [vmem:[%s817_s18 + $0x30] sm:$0xff] %v458_v38 }
  0x59   : > { %vm312_vm10 = vcmp.gt.f32.partialorder %v304_v39, 0.5 }
  0x5a   : > { %v459_v40 = vsel %vm312_vm10, 1.0, %v654_v47 }
  0x5b   : > { %336 = vst [vmem:[%s817_s18 + $0x38] sm:$0xff] %v459_v40 }
  0x5c   : > { %580 = shalt.err (!%p577_p5)
}
  0x5d   : > { %s581_s17 = scalar_lea.hbm %s857_s5, 1024  ;;  %s585_s24 = scalar_lea.hbm %s909_s1, 2048 }
  0x5e   : > { %p582_p4 = scmp.ne.s32.totalorder %s857_s5, %s581_s17  ;;  %p586_p12 = scmp.lt.u32.totalorder %s857_s5, %s909_s1 }
  0x5f   : > { %p587_p1 = scmp.lt.u32.totalorder %s585_s24, %s581_s17  ;;  %p589_p8 = scmp.lt.u32.totalorder %s581_s17, %s857_s5 }
  0x60   : > { %p583_p7 = pnand %p582_p4, %p917_p9 }
  0x61   : > { %p588_p3 = por %p587_p1, %p586_p12 }
  0x62   : > { %p584_p10 = pneg %p583_p7 }
  0x63   : > { %p590_p11 = por %p589_p8, %p588_p3 }
  0x65   : > { %p591_p0 = pnand %p590_p11, %p584_p10 }
  0x67   : > { %594 = shalt.err (!%p591_p0)
}
  0x68   : > { %s656_s3 = smov 256   ;;  %s657_s4 = smov 16  }
  0x69   : > { %472 = dma.vmem_to_hbm [thread:$0]  (%p917_p9), %s851_s27, 1024, %s857_s5, %s338_s9, %s656_s3, %s656_s3, %s657_s4  }
  0x6a PF: > { %s369_s18 = sand.u32 1, %s629_s6   ;;  %p918_p6 = scmp.ne.s32.totalorder %s914_s21, 0 }
  0x6b   : > { %p919_p13 = scmp.ge.s32.totalorder %s649_s11, 2  ;;  %s370_s29 = scalar_lea.sflag [#allocation4], %s369_s18 }
  0x6d   : > { %p479_p2 = pnand %p919_p13, %p918_p6 }
  0x6f   : > { %624 = dma.done.wait (!%p479_p2), %s370_s29, 1024  }
  0x70   : > { %626 = vsyncadd (!%p479_p2), %s370_s29, 4294966272  ;;  %s17_s11 = sadd.s32 1, %s649_s11   ;;  %s920_s6 = smov %s633_s7 }
  0x71   : > { %p14_p5 = scmp.ge.s32.totalorder %s17_s11, 4   ;;  %s921_s7 = smov %s637_s8 }
  0x72   : > { %s922_s8 = smov %s724_s20  ;;  %s923_s9 = smov %s645_s10 }
  0x73   : > { %s924_s10 = smov %s926_s14  ;;  %16 = sbr.rel (!%p14_p5) target bundleno = 6 (0x6), region = 69 }
  0x7a   :  { %375 = vsyncpa [#allocation3], 1 }
  0x7b   :  { %377 = vsyncpa [#allocation3 + $0x1], 1 }
  0x7c   :  { %378 = vsyncpa [#allocation4], 1 }
  0x7d   :  { %380 = vsyncpa [#allocation4 + $0x1], 1 }

</bundles_post_ra>
